<compile_context>
chip_gen: v5e
topology: v5e:2x2
jax: 0.10.0
libtpu: 0.0.40
codegen_flags: <defaults>
</compile_context>

<pallas_src>
import functools

import jax
import jax.numpy as jnp
from jax.experimental import pallas as pl
from jax.experimental.pallas import tpu as pltpu


def mlp_kernel(x_ref, w1_ref, b1_ref, w2_ref, b2_ref, w3_ref, b3_ref, o_ref):
    # x_ref:  [1, TN] f32  lane-dense batch tile (batch on lanes)
    # w1_ref: [W, 1]  f32  Linear(1, W).weight        (column)
    # b1_ref: [W, 1]  f32
    # w2_ref: [W, W]  f32  Linear(W, W).weight        ([out, in])
    # b2_ref: [W, 1]  f32
    # w3_ref: [W, 1]  f32  Linear(W, 1).weight^T      (column)
    # b3_ref: [1]     f32  SMEM scalar
    # o_ref:  [1, TN] f32  lane-dense output row
    x = x_ref[...]                                                # [1, TN]

    # Layer 1: Linear(1, W) -> outer product on the VPU, width on sublanes.
    h1 = jnp.maximum(w1_ref[...] * x + b1_ref[...], 0.0)         # [W, TN]

    # Layer 2: Linear(W, W) on the MXU, f32 operands & accumulation.
    h2 = jnp.dot(w2_ref[...], h1,
                 preferred_element_type=jnp.float32) + b2_ref[...]
    h2 = jnp.maximum(h2, 0.0)                                     # [W, TN]

    # Layer 3: Linear(W, 1) -> sublane reduction (XLU) + SMEM scalar bias.
    out = jnp.sum(h2 * w3_ref[...], axis=0, keepdims=True) + b3_ref[0]  # [1, TN]

    o_ref[...] = out.astype(o_ref.dtype)                          # full-width vst


def _round_up(x, m):
    return ((x + m - 1) // m) * m


def _pick_tile(n, max_tn):
    """Lane tile (multiple of 128) and padded batch (multiple of the tile)."""
    n128 = _round_up(n, 128)
    if n128 <= 256:
        tn = n128                                   # tiny batch: single block
    else:
        # >= 2 blocks so v7x megacore gets both TensorCores busy; cap the tile.
        tn = min(max_tn, _round_up((n128 + 1) // 2, 128))
    n_pad = _round_up(n128, tn)
    return tn, n_pad


@functools.partial(jax.jit, static_argnames=("max_tn",))
def mlp_forward(x, params, *, max_tn=8192):
    """x: [N, 1] float32.  params: PyTorch-layout weights (see init_params)."""
    n = x.shape[0]
    tn, n_pad = _pick_tile(n, max_tn)
    num_blocks = n_pad // tn

    # Lane-major [1, n_pad] input slab: contiguous reshape + lane padding.
    x_row = x.reshape(1, n)
    if n_pad != n:
        x_row = jnp.pad(x_row, ((0, 0), (0, n_pad - n)))

    b3_scalar = params["b3"].reshape((1,))          # SMEM scalar

    resident = lambda shape: pl.BlockSpec(shape, lambda i: (0, 0))
    width = params["w2"].shape[0]

    grid_spec = pltpu.PrefetchScalarGridSpec(
        num_scalar_prefetch=0,
        grid=(num_blocks,),
        in_specs=[
            pl.BlockSpec((1, tn), lambda i: (0, i)),             # x (lane-dense)
            resident((width, 1)),                                # w1
            resident((width, 1)),                                # b1
            resident((width, width)),                            # w2
            resident((width, 1)),                                # b2
            resident((width, 1)),                                # w3
            pl.BlockSpec(memory_space=pltpu.MemorySpace.SMEM),   # b3 scalar
        ],
        out_specs=pl.BlockSpec((1, tn), lambda i: (0, i)),       # lane-dense out
    )

    out_slab = pl.pallas_call(
        mlp_kernel,
        out_shape=jax.ShapeDtypeStruct((1, n_pad), jnp.float32),
        grid_spec=grid_spec,
        compiler_params=pltpu.CompilerParams(
            dimension_semantics=("parallel",),       # megacore split on v7x
        ),
    )(x_row, params["w1"], params["b1"], params["w2"], params["b2"],
      params["w3"], b3_scalar)

    return out_slab[0, :n].reshape(n, 1)


def init_params(key, width):
    """Deterministic init mimicking PyTorch's default Linear init
    (uniform(-1/sqrt(fan_in), 1/sqrt(fan_in))), stored in the kernel's
    transposed (width-on-sublanes) layout."""
    ks = jax.random.split(key, 6)

    def uniform(k, shape, fan_in):
        bound = 1.0 / (fan_in ** 0.5)
        return jax.random.uniform(k, shape, jnp.float32, -bound, bound)

    return {
        "w1": uniform(ks[0], (width, 1), 1),          # Linear(1, W).weight
        "b1": uniform(ks[1], (width, 1), 1),
        "w2": uniform(ks[2], (width, width), width),  # Linear(W, W).weight [out,in]
        "b2": uniform(ks[3], (width, 1), width),
        "w3": uniform(ks[4], (width, 1), width),      # Linear(W, 1).weight^T
        "b3": uniform(ks[5], (1, 1), width),
    }


def mlp_reference(x, params):
    """Pure-JAX f32 reference of the same PyTorch math (x: [N, 1])."""
    hi = jax.lax.Precision.HIGHEST
    h1 = jnp.maximum(x @ params["w1"].T + params["b1"].T, 0.0)              # [N, W]
    h2 = jnp.maximum(
        jnp.dot(h1, params["w2"].T, precision=hi) + params["b2"].T, 0.0)    # [N, W]
    return jnp.dot(h2, params["w3"], precision=hi) + params["b3"]           # [N, 1]


if __name__ == "__main__":
    width = 32
    key = jax.random.PRNGKey(0)
    k_x, k_p = jax.random.split(key)
    params = init_params(k_p, width)

    # Single-block tiny batch, a 2-block batch with lane padding (1000 -> 1024),
    # and a larger 2-block batch exercising bigger tiles (5000 -> 2x2560).
    for batch in (8, 1000, 5000):
        x = jax.random.normal(jax.random.fold_in(k_x, batch), (batch, 1),
                              dtype=jnp.float32)
        out = jax.block_until_ready(mlp_forward(x, params))
        assert out.shape == (batch, 1)

        ref = mlp_reference(x, params)
        err = float(jnp.max(jnp.abs(out - ref)))
        assert jnp.allclose(out, ref, atol=2e-3, rtol=2e-3), ("mismatch", err)

    print("KERNEL_OK")
</pallas_src>

<mosaic_0001>
module attributes {stable_mosaic.version = 11 : i64} {
  func.func @mlp_kernel(%arg0: i32, %arg1: memref<1x128xf32, #tpu.memory_space<vmem>>, %arg2: memref<32x1xf32, #tpu.memory_space<vmem>>, %arg3: memref<32x1xf32, #tpu.memory_space<vmem>>, %arg4: memref<32x32xf32, #tpu.memory_space<vmem>>, %arg5: memref<32x1xf32, #tpu.memory_space<vmem>>, %arg6: memref<32x1xf32, #tpu.memory_space<vmem>>, %arg7: memref<1xf32, #tpu.memory_space<smem>>, %arg8: memref<1x128xf32, #tpu.memory_space<vmem>>) attributes {dimension_semantics = [#tpu.dimension_semantics<parallel>], iteration_bounds = array<i64: 1>, scalar_prefetch = 0 : i64, scratch_operands = 0 : i64, tpu.core_type = #tpu.core_type<tc>, window_params = [{transform_indices = @transform_0, window_bounds = array<i64: 1, 128>}, {pipeline_mode = #tpu.pipeline_mode<synchronous>, transform_indices = @transform_1, window_bounds = array<i64: 32, 1>}, {pipeline_mode = #tpu.pipeline_mode<synchronous>, transform_indices = @transform_2, window_bounds = array<i64: 32, 1>}, {pipeline_mode = #tpu.pipeline_mode<synchronous>, transform_indices = @transform_3, window_bounds = array<i64: 32, 32>}, {pipeline_mode = #tpu.pipeline_mode<synchronous>, transform_indices = @transform_4, window_bounds = array<i64: 32, 1>}, {pipeline_mode = #tpu.pipeline_mode<synchronous>, transform_indices = @transform_5, window_bounds = array<i64: 32, 1>}, {transform_indices = @transform_6, window_bounds = array<i64: 1>}, {transform_indices = @transform_7, window_bounds = array<i64: 1, 128>}]} {
    %c0 = arith.constant 0 : index
    %c0_0 = arith.constant 0 : index
    %0 = vector.load %arg1[%c0, %c0_0] : memref<1x128xf32, #tpu.memory_space<vmem>>, vector<1x128xf32>
    %c0_1 = arith.constant 0 : index
    %c0_2 = arith.constant 0 : index
    %1 = vector.load %arg2[%c0_1, %c0_2] : memref<32x1xf32, #tpu.memory_space<vmem>>, vector<32x1xf32>
    %2 = vector.broadcast %1 : vector<32x1xf32> to vector<32x128xf32>
    %3 = vector.broadcast %0 : vector<1x128xf32> to vector<32x128xf32>
    %4 = arith.mulf %2, %3 : vector<32x128xf32>
    %c0_3 = arith.constant 0 : index
    %c0_4 = arith.constant 0 : index
    %5 = vector.load %arg3[%c0_3, %c0_4] : memref<32x1xf32, #tpu.memory_space<vmem>>, vector<32x1xf32>
    %6 = vector.broadcast %5 : vector<32x1xf32> to vector<32x128xf32>
    %7 = arith.addf %4, %6 : vector<32x128xf32>
    %cst = arith.constant 0.000000e+00 : f32
    %8 = vector.broadcast %cst : f32 to vector<32x128xf32>
    %9 = arith.maximumf %7, %8 : vector<32x128xf32>
    %c0_5 = arith.constant 0 : index
    %c0_6 = arith.constant 0 : index
    %10 = vector.load %arg4[%c0_5, %c0_6] : memref<32x32xf32, #tpu.memory_space<vmem>>, vector<32x32xf32>
    %cst_7 = arith.constant dense<0.000000e+00> : vector<32x128xf32>
    %11 = tpu.matmul %10, %9, %cst_7 {dimension_numbers = #tpu.dot_dimension_numbers<[1], [0], [0], [1], [0, 0, 1, 1], [], []>} : vector<32x32xf32>, vector<32x128xf32>, vector<32x128xf32> -> vector<32x128xf32>
    %c0_8 = arith.constant 0 : index
    %c0_9 = arith.constant 0 : index
    %12 = vector.load %arg5[%c0_8, %c0_9] : memref<32x1xf32, #tpu.memory_space<vmem>>, vector<32x1xf32>
    %13 = vector.broadcast %12 : vector<32x1xf32> to vector<32x128xf32>
    %14 = arith.addf %11, %13 : vector<32x128xf32>
    %cst_10 = arith.constant 0.000000e+00 : f32
    %15 = vector.broadcast %cst_10 : f32 to vector<32x128xf32>
    %16 = arith.maximumf %14, %15 : vector<32x128xf32>
    %c0_11 = arith.constant 0 : index
    %c0_12 = arith.constant 0 : index
    %17 = vector.load %arg6[%c0_11, %c0_12] : memref<32x1xf32, #tpu.memory_space<vmem>>, vector<32x1xf32>
    %18 = vector.broadcast %17 : vector<32x1xf32> to vector<32x128xf32>
    %19 = arith.mulf %16, %18 : vector<32x128xf32>
    %cst_13 = arith.constant dense<0.000000e+00> : vector<128xf32>
    %20 = vector.multi_reduction <add>, %19, %cst_13 [0] : vector<32x128xf32> to vector<128xf32>
    %21 = vector.shape_cast %20 : vector<128xf32> to vector<1x128xf32>
    %c0_14 = arith.constant 0 : index
    %22 = memref.load %arg7[%c0_14] : memref<1xf32, #tpu.memory_space<smem>>
    %23 = vector.broadcast %22 : f32 to vector<1x128xf32>
    %24 = arith.addf %21, %23 : vector<1x128xf32>
    %c0_15 = arith.constant 0 : index
    %c0_16 = arith.constant 0 : index
    %25 = vector.load %arg8[%c0_15, %c0_16] : memref<1x128xf32, #tpu.memory_space<vmem>>, vector<1x128xf32>
    tpu.vector_store %arg8[%c0_15, %c0_16], %24 {strides = array<i32>} : memref<1x128xf32, #tpu.memory_space<vmem>>, vector<1x128xf32>,
    return
  }
  func.func @transform_0(%arg0: i32) -> (i32, i32) {
    %c0_i32 = arith.constant 0 : i32
    %c0_i32_0 = arith.constant 0 : i32
    return %c0_i32, %arg0 : i32, i32
  }
  func.func @transform_1(%arg0: i32) -> (i32, i32) {
    %c0_i32 = arith.constant 0 : i32
    %c0_i32_0 = arith.constant 0 : i32
    %c0_i32_1 = arith.constant 0 : i32
    return %c0_i32, %c0_i32_0 : i32, i32
  }
  func.func @transform_2(%arg0: i32) -> (i32, i32) {
    %c0_i32 = arith.constant 0 : i32
    %c0_i32_0 = arith.constant 0 : i32
    %c0_i32_1 = arith.constant 0 : i32
    return %c0_i32, %c0_i32_0 : i32, i32
  }
  func.func @transform_3(%arg0: i32) -> (i32, i32) {
    %c0_i32 = arith.constant 0 : i32
    %c0_i32_0 = arith.constant 0 : i32
    %c0_i32_1 = arith.constant 0 : i32
    return %c0_i32, %c0_i32_0 : i32, i32
  }
  func.func @transform_4(%arg0: i32) -> (i32, i32) {
    %c0_i32 = arith.constant 0 : i32
    %c0_i32_0 = arith.constant 0 : i32
    %c0_i32_1 = arith.constant 0 : i32
    return %c0_i32, %c0_i32_0 : i32, i32
  }
  func.func @transform_5(%arg0: i32) -> (i32, i32) {
    %c0_i32 = arith.constant 0 : i32
    %c0_i32_0 = arith.constant 0 : i32
    %c0_i32_1 = arith.constant 0 : i32
    return %c0_i32, %c0_i32_0 : i32, i32
  }
  func.func @transform_6(%arg0: i32) -> i32 {
    %c0_i32 = arith.constant 0 : i32
    %c0_i32_0 = arith.constant 0 : i32
    return %c0_i32 : i32
  }
  func.func @transform_7(%arg0: i32) -> (i32, i32) {
    %c0_i32 = arith.constant 0 : i32
    %c0_i32_0 = arith.constant 0 : i32
    return %c0_i32, %arg0 : i32, i32
  }
}

</mosaic_0001>

<bundles_post_ra>
// kernel: mlp_forward.1
= control target key start
LH: loop header
LB: loop body
LE: loop exit
PB: predicated region body
PF: predicated region fallthrough
CT: control target
= control target key end

     0   :  { %v231_v0 = vmov 0   ;;  %vm119_vm0 = vcmask 261120   ;;  %s341_s2 = inlined_call_operand.vmem [shape: f32[32,1], index: 2, kind: input, shape index: {}]   ;;  %s342_s1 = inlined_call_operand.vmem [shape: f32[32,1], index: 1, kind: input, shape index: {}]   ;;  %s343_s0 = inlined_call_operand.vmem [shape: f32[1,128], index: 0, kind: input, shape index: {}]   ;;  %s344_s4 = inlined_call_operand.vmem [shape: f32[32,1], index: 4, kind: input, shape index: {}]   ;;  %s345_s5 = inlined_call_operand.vmem [shape: f32[32,1], index: 5, kind: input, shape index: {}]   ;;  %s346_s3 = inlined_call_operand.vmem [shape: f32[32,32], index: 3, kind: input, shape index: {}]   ;;  %s347_s6 = inlined_call_operand.<no memory space> [shape: f32[1], index: 6, kind: input, shape index: {}]   ;;  %s348_s7 = inlined_call_operand.vmem [shape: f32[1,128], index: 7, kind: output, shape index: {}]  }
   0x1   :  { %229 = vset.pattern.permute.xlu2 %v231_v0  ;;  %228 = vset.pattern.permute.xlu1 %v231_v0  ;;  %v62_v1 = vld [vmem:[%s341_s2 + $0x18] sm:$0xff]  ;;  %v61_v2 = vld [vmem:[%s341_s2 + $0x10] sm:$0xff]  ;;  %v29_v4 = vld [vmem:[%s342_s1 + $0x8] sm:$0xff] }
   0x2   :  { %v31_v3 = vld [vmem:[%s342_s1 + $0x18] sm:$0xff]  ;;  %227 = vset.pattern.permute.xlu0 %v231_v0  ;;  %80 = vperm.xlu1 %228, %v62_v1   ;;  %v30_v5 = vld [vmem:[%s342_s1 + $0x10] sm:$0xff]  ;;  %v28_v6 = vld [vmem:[%s342_s1] sm:$0xff] }
   0x3   :  { %75 = vperm.xlu2 %229, %v61_v2   ;;  %49 = vperm.xlu0 %227, %v31_v3   ;;  %v59_v7 = vld [vmem:[%s341_s2] sm:$0xff]  ;;  %v60_v8 = vld [vmem:[%s341_s2 + $0x8] sm:$0xff]  ;;  %v97_v10 = vld [vmem:[%s344_s4 + $0x10] sm:$0xff] }
   0x4   :  { %v95_v9 = vld [vmem:[%s344_s4] sm:$0xff]  ;;  %v96_v11 = vld [vmem:[%s344_s4 + $0x8] sm:$0xff]  ;;  %v98_v12 = vld [vmem:[%s344_s4 + $0x18] sm:$0xff] }
   0x5   :  { %v166_v13 = vld [vmem:[%s345_s5 + $0x8] sm:$0xff]  ;;  %v165_v14 = vld [vmem:[%s345_s5] sm:$0xff]  ;;  %v167_v15 = vld [vmem:[%s345_s5 + $0x10] sm:$0xff] }
   0x6   :  { %v168_v16 = vld [vmem:[%s345_s5 + $0x18] sm:$0xff]  ;;  %v230_v17 = vld [vmem:[%s343_s0] ss:$0 sm:$0xff]  ;;  %v92_v39 = vld [vmem:[%s346_s3 + $0x8] sm:$0xff] }
   0x7   :  { %v91_v38 = vld [vmem:[%s346_s3] sm:$0xff]  ;;  %v93_v40 = vld [vmem:[%s346_s3 + $0x10] sm:$0xff]  ;;  %v94_v41 = vld [vmem:[%s346_s3 + $0x18] sm:$0xff] }
   0xa   :  { %39 = vperm.xlu1 %228, %v29_v4  }
   0xb   :  { %44 = vperm.xlu0 %227, %v30_v5   ;;  %34 = vperm.xlu2 %229, %v28_v6  }
  0x12   :  { %65 = vperm.xlu1 %228, %v59_v7  }
  0x13   :  { %70 = vperm.xlu0 %227, %v60_v8   ;;  %101 = vperm.xlu2 %229, %v95_v9  }
  0x1a   :  { %111 = vperm.xlu1 %228, %v97_v10   ;;  %v203_v10 = vstv %s347_s6 }
  0x1b   :  { %106 = vperm.xlu0 %227, %v96_v11   ;;  %116 = vperm.xlu2 %229, %v98_v12  }
  0x22   :  { %176 = vperm.xlu1 %228, %v166_v13  }
  0x23   :  { %171 = vperm.xlu0 %227, %v165_v14   ;;  %181 = vperm.xlu2 %229, %v167_v15  }
  0x2b   :  { %186 = vperm.xlu0 %227, %v168_v16  }
  0x5d   :  { %v76_v22 = vpop.permute.xlu2 %75 }
  0x65   :  { %v35_v29 = vpop.permute.xlu2 %34 }
  0x66   :  { %v55_v30 = vmul.f32 %v230_v17, %v35_v29 }
  0x6d   :  { %v102_v42 = vpop.permute.xlu2 %101 }
  0x74   :  { %v81_v18 = vpop.permute.xlu1 %80 }
  0x75   :  { %v50_v19 = vpop.permute.xlu0 %49  ;;  %v117_v47 = vpop.permute.xlu2 %116 }
  0x76   :  { %v58_v20 = vmul.f32 %v230_v17, %v50_v19 }
  0x78   :  { %v86_v21 = vadd.f32 %v81_v18, %v58_v20 }
  0x7a   :  { %v90_v23 = vmax.f32 %v86_v21, 0.0 }
  0x7c   :  { %144 = vmatpush.msra.mxu0 %v90_v23  ;;  %214 = vmatpush.msra.mxu1 %v90_v23  ;;  %v40_v24 = vpop.permute.xlu1 %39 }
  0x7d   :  { %215 = vmatpush.msra.mxu2 %v90_v23  ;;  %216 = vmatpush.msra.mxu3 %v90_v23  ;;  %v45_v25 = vpop.permute.xlu0 %44  ;;  %v56_v31 = vmul.f32 %v230_v17, %v40_v24  ;;  %v182_v62 = vpop.permute.xlu2 %181 }
  0x7e   :  { %v57_v26 = vmul.f32 %v230_v17, %v45_v25 }
  0x80   :  { %v85_v27 = vadd.f32 %v76_v22, %v57_v26 }
  0x82   :  { %v89_v28 = vmax.f32 %v85_v27, 0.0 }
  0x84   :  { %145 = vmatpush.msra.mxu0 %v89_v28  ;;  %217 = vmatpush.msra.mxu1 %v89_v28  ;;  %v66_v32 = vpop.permute.xlu1 %65 }
  0x85   :  { %218 = vmatpush.msra.mxu2 %v89_v28  ;;  %219 = vmatpush.msra.mxu3 %v89_v28  ;;  %v71_v33 = vpop.permute.xlu0 %70  ;;  %v83_v35 = vadd.f32 %v66_v32, %v55_v30 }
  0x86   :  { %v84_v34 = vadd.f32 %v71_v33, %v56_v31 }
  0x87   :  { %v87_v37 = vmax.f32 %v83_v35, 0.0 }
  0x88   :  { %v88_v36 = vmax.f32 %v84_v34, 0.0 }
  0x8a   :  { %146 = vmatpush.msra.mxu0 %v88_v36  ;;  %220 = vmatpush.msra.mxu1 %v88_v36 }
  0x8b   :  { %221 = vmatpush.msra.mxu2 %v88_v36  ;;  %222 = vmatpush.msra.mxu3 %v88_v36 }
  0x8c   :  { %147 = vmatpush.msra.mxu0 %v87_v37  ;;  %223 = vmatpush.msra.mxu1 %v87_v37  ;;  %v112_v44 = vpop.permute.xlu1 %111 }
  0x8d   :  { %224 = vmatpush.msra.mxu2 %v87_v37  ;;  %225 = vmatpush.msra.mxu3 %v87_v37  ;;  %v107_v43 = vpop.permute.xlu0 %106 }
  0x8e   :  { %210 = vmatmul.msk.f32.vlgmr.msra.gmra.mxu0 %vm119_vm0, %v91_v38  ;;  %211 = vmatmul.msk.f32.vlgmr.msra.gmra.mxu1 %vm119_vm0, %v92_v39 }
  0x8f   :  { %212 = vmatmul.msk.f32.vlgmr.msra.gmra.mxu2 %vm119_vm0, %v93_v40  ;;  %213 = vmatmul.msk.f32.vlgmr.msra.gmra.mxu3 %vm119_vm0, %v94_v41 }
  0x94   :  { %v177_v53 = vpop.permute.xlu1 %176 }
  0x95   :  { %v172_v50 = vpop.permute.xlu0 %171 }
  0x9d   :  { %v187_v1 = vpop.permute.xlu0 %186 }
 0x10b   :  { %v149_v45 = vpop.f32.mrf.mxu0  ;;  %v152_v46 = vpop.f32.mrf.mxu1 }
 0x10c   :  { %v150_v48 = vadd.f32 %v149_v45, %v102_v42  ;;  %v153_v49 = vadd.f32 %v152_v46, %v107_v43 }
 0x10e   :  { %v161_v51 = vmax.f32 %v150_v48, 0.0  ;;  %v162_v52 = vmax.f32 %v153_v49, 0.0 }
 0x110   :  { %v189_v56 = vmul.f32 %v172_v50, %v161_v51  ;;  %v190_v57 = vmul.f32 %v177_v53, %v162_v52 }
 0x112   :  { %v155_v54 = vpop.f32.mrf.mxu2  ;;  %v158_v55 = vpop.f32.mrf.mxu3  ;;  %v193_v63 = vadd.f32 %v190_v57, %v189_v56 }
 0x113   :  { %v156_v58 = vadd.f32 %v155_v54, %v112_v44  ;;  %v159_v59 = vadd.f32 %v158_v55, %v117_v47 }
 0x115   :  { %v163_v60 = vmax.f32 %v156_v58, 0.0  ;;  %v164_v61 = vmax.f32 %v159_v59, 0.0 }
 0x117   :  { %v191_v0 = vmul.f32 %v182_v62, %v163_v60  ;;  %v192_v3 = vmul.f32 %v187_v1, %v164_v61 }
 0x119   :  { %v194_v2 = vadd.f32 %v193_v63, %v191_v0 }
 0x11b   :  { %v195_v4 = vadd.f32 %v194_v2, %v192_v3 }
 0x11d   :  { %v196_v5 = vrot.slane %v195_v4, 4 }
 0x11f   :  { %v197_v6 = vadd.f32 %v196_v5, %v195_v4 }
 0x121   :  { %v198_v7 = vrot.slane %v197_v6, 2 }
 0x123   :  { %v199_v8 = vadd.f32 %v198_v7, %v197_v6 }
 0x125   :  { %v200_v9 = vrot.slane %v199_v8, 1 }
 0x127   :  { %v201_v11 = vadd.f32 %v200_v9, %v199_v8 }
 0x129   :  { %v204_v12 = vadd.f32 %v203_v10, %v201_v11 }
 0x12b   :  { %205 = vst [vmem:[%s348_s7] sm:$0x1] %v204_v12 }

</bundles_post_ra>
